<compile_context>
chip_gen: v7x
topology: tpu7x:2x2x1
jax: 0.10.0
libtpu: 0.0.40
codegen_flags: <defaults>
</compile_context>

<pallas_src>
import functools
import math

import jax
import jax.numpy as jnp
from jax.experimental import pallas as pl
from jax.experimental.pallas import tpu as pltpu

_LANE = 128


def _self_attention_kernel(q_ref, kv_ref, out_ref, w_ref, *, num_keys, scale):
    """One (TQ, D) query tile against the full (S_kv, D) key/value block.

    num_keys: number of valid (unpadded) key columns (static).
    scale:    1 / sqrt(d_k) (static Python float).
    """
    q = q_ref[...]          # (TQ, D) in the source dtype
    kv = kv_ref[...]        # (S_kv, D) in the source dtype
    s_kv = kv.shape[0]

    # Fold 1/sqrt(d_k) into the small (TQ, D) operand (S/D x fewer multiplies
    # than scaling the (TQ, S) scores).  Weak-typed float keeps q's dtype.
    q_scaled = q * scale

    # scores = (Q * scale) @ K^T -- contract the feature dim of both operands
    # directly on the MXU (no explicit transpose), accumulate in f32.
    scores = jax.lax.dot_general(
        q_scaled,
        kv,
        dimension_numbers=(((1,), (1,)), ((), ())),
        preferred_element_type=jnp.float32,
    )  # (TQ, S_kv) f32

    # Mask the zero-padded key columns (lane padding) before the softmax.
    if num_keys < s_kv:
        col = jax.lax.broadcasted_iota(jnp.int32, scores.shape, 1)
        scores = jnp.where(col < num_keys, scores, -jnp.inf)

    # Numerically stable softmax over the key axis.  The full key row is
    # resident per query tile, so the softmax stays exact under tiling.
    m = jnp.max(scores, axis=-1, keepdims=True)
    e = jnp.exp(scores - m)
    denom = jnp.sum(e, axis=-1, keepdims=True)
    # Exact reciprocal: denom is only (TQ, 1) so this costs nothing and keeps
    # the returned weight rows summing to exactly 1.
    w = e * (1.0 / denom)

    # Cast the probabilities to the output dtype ONCE and reuse them for both
    # the weights writeback and the P @ V operand (single (TQ, S) cast pass,
    # full-rate MXU for the second matmul on bf16 inputs).
    w_lp = w.astype(w_ref.dtype)
    w_ref[...] = w_lp

    out = jnp.dot(w_lp, kv, preferred_element_type=jnp.float32)  # (TQ, D)
    out_ref[...] = out.astype(out_ref.dtype)


def _vmem_estimate(tq, s_kv, d, itemsize):
    """Bytes of VMEM for one grid step: double-buffered pipelined blocks
    (Q, KV, out, weights) in the I/O dtype plus the f32 (TQ, S_kv) softmax
    temporaries (scores / exp / probs)."""
    io_blocks = 2 * itemsize * (tq * d + s_kv * d + tq * d + tq * s_kv)
    f32_temps = 3 * 4 * tq * s_kv
    return io_blocks + f32_temps


def _choose_query_tile(s, s_kv, d, itemsize, budget):
    """Largest query tile that divides S, is a multiple of 8 (sublane rule),
    and keeps the VMEM estimate under the per-generation budget."""
    candidates = [t for t in (1024, 512, 256, 128, 64, 32, 16, 8)
                  if t <= s and s % t == 0]
    if not candidates:
        candidates = [s]  # odd S: single full-row block (full-dim is legal)
    for tq in candidates:
        if _vmem_estimate(tq, s_kv, d, itemsize) <= budget:
            return tq
    return candidates[-1]


def self_attention_layer(volume):
    """Pallas equivalent of SelfAttentionLayer.forward.

    volume: (B, S, D) array.
    Returns (attention_output (B, S, D), attention_weights (B, S, S)).
    """
    B, S, D = volume.shape
    itemsize = jnp.dtype(volume.dtype).itemsize

    # Lane-dense key axis: pad K/V (and the weights output) to a multiple of
    # 128 so the dominant (TQ, S) weights store is an unmasked vst; padded
    # columns are masked to -inf in-kernel and sliced off afterwards.
    s_kv = S if S % _LANE == 0 else ((S + _LANE - 1) // _LANE) * _LANE
    kv = volume if s_kv == S else jnp.pad(
        volume, ((0, 0), (0, s_kv - S), (0, 0)))

    # Per-generation VMEM budget (128 MiB on v5e/v6e, 64 MiB on v7x) with
    # headroom for Mosaic-internal scratch.
    try:
        vmem_cap = pltpu.get_tpu_info().vmem_capacity_bytes
    except Exception:
        vmem_cap = 64 * 1024 * 1024  # conservative: smallest current part (v7x)
    budget = (vmem_cap * 3) // 4

    TQ = _choose_query_tile(S, s_kv, D, itemsize, budget)
    vmem_est = _vmem_estimate(TQ, s_kv, D, itemsize)
    # Always set the scoped-VMEM limit explicitly (v5e's default is 16 MiB);
    # floor at 32 MiB so Mosaic-internal scratch is never starved, and never
    # exceed ~3/4 of the physical VMEM (<= 48 MiB on v7x).
    vmem_limit = int(min(budget, max((vmem_est * 3) // 2, 32 * 1024 * 1024)))

    grid = (B, S // TQ)

    kernel = functools.partial(
        _self_attention_kernel, num_keys=S, scale=1.0 / math.sqrt(D))

    q_spec = pl.BlockSpec((pl.Squeezed(), TQ, D), lambda b, qi: (b, qi, 0))
    kv_spec = pl.BlockSpec((pl.Squeezed(), s_kv, D), lambda b, qi: (b, 0, 0))
    out_spec = pl.BlockSpec((pl.Squeezed(), TQ, D), lambda b, qi: (b, qi, 0))
    w_spec = pl.BlockSpec((pl.Squeezed(), TQ, s_kv), lambda b, qi: (b, qi, 0))

    out, w_padded = pl.pallas_call(
        kernel,
        out_shape=(
            jax.ShapeDtypeStruct((B, S, D), volume.dtype),
            jax.ShapeDtypeStruct((B, S, s_kv), volume.dtype),
        ),
        grid_spec=pltpu.PrefetchScalarGridSpec(
            num_scalar_prefetch=0,
            grid=grid,
            in_specs=[q_spec, kv_spec],
            out_specs=(out_spec, w_spec),
        ),
        compiler_params=pltpu.CompilerParams(
            dimension_semantics=("parallel", "parallel"),
            vmem_limit_bytes=vmem_limit,
        ),
    )(volume, kv)

    weights = w_padded if s_kv == S else w_padded[:, :, :S]
    return out, weights


def _reference(volume):
    d_k = volume.shape[-1]
    scores = jnp.einsum(
        "bsd,btd->bst", volume, volume,
        precision=jax.lax.Precision.HIGHEST) / jnp.sqrt(jnp.float32(d_k))
    w = jax.nn.softmax(scores, axis=-1)
    out = jnp.einsum("bst,btd->bsd", w, volume,
                     precision=jax.lax.Precision.HIGHEST)
    return out.astype(volume.dtype), w.astype(volume.dtype)


if __name__ == "__main__":
    B, S, D = 2, 8, 32
    key = jax.random.PRNGKey(0)
    volume = jax.random.normal(key, (B, S, D), dtype=jnp.float32)

    out, weights = self_attention_layer(volume)
    out, weights = jax.block_until_ready((out, weights))

    ref_out, ref_w = _reference(volume)
    assert out.shape == (B, S, D)
    assert weights.shape == (B, S, S)
    # Exact softmax normalization (no approx reciprocal): rows sum to 1.
    assert jnp.allclose(jnp.sum(weights, axis=-1), 1.0, atol=1e-5)
    # Remaining slack covers MXU default-precision (bf16-pass) f32 matmuls
    # versus the HIGHEST-precision reference, not the softmax.
    assert jnp.allclose(out, ref_out, atol=1e-2, rtol=1e-2)
    assert jnp.allclose(weights, ref_w, atol=1e-2, rtol=1e-2)

    print("KERNEL_OK")
</pallas_src>

<mosaic_0001>
module attributes {stable_mosaic.version = 11 : i64} {
  func.func @_self_attention_kernel(%arg0: i32, %arg1: i32, %arg2: memref<1x8x32xf32, #tpu.memory_space<vmem>>, %arg3: memref<1x128x32xf32, #tpu.memory_space<vmem>>, %arg4: memref<1x8x32xf32, #tpu.memory_space<vmem>>, %arg5: memref<1x8x128xf32, #tpu.memory_space<vmem>>) attributes {dimension_semantics = [#tpu.dimension_semantics<parallel>, #tpu.dimension_semantics<parallel>], iteration_bounds = array<i64: 2, 1>, scalar_prefetch = 0 : i64, scratch_operands = 0 : i64, tpu.core_type = #tpu.core_type<tc>, window_params = [{transform_indices = @transform_0, window_bounds = array<i64: 1, 8, 32>}, {transform_indices = @transform_1, window_bounds = array<i64: 1, 128, 32>}, {transform_indices = @transform_2, window_bounds = array<i64: 1, 8, 32>}, {transform_indices = @transform_3, window_bounds = array<i64: 1, 8, 128>}]} {
    %c0 = arith.constant 0 : index
    %c0_0 = arith.constant 0 : index
    %c0_1 = arith.constant 0 : index
    %0 = vector.load %arg2[%c0, %c0_0, %c0_1] : memref<1x8x32xf32, #tpu.memory_space<vmem>>, vector<1x8x32xf32>
    %1 = vector.shape_cast %0 : vector<1x8x32xf32> to vector<8x32xf32>
    %c0_2 = arith.constant 0 : index
    %c0_3 = arith.constant 0 : index
    %c0_4 = arith.constant 0 : index
    %2 = vector.load %arg3[%c0_2, %c0_3, %c0_4] : memref<1x128x32xf32, #tpu.memory_space<vmem>>, vector<1x128x32xf32>
    %3 = vector.shape_cast %2 : vector<1x128x32xf32> to vector<128x32xf32>
    %cst = arith.constant 0.176776692 : f32
    %4 = vector.broadcast %cst : f32 to vector<8x32xf32>
    %5 = arith.mulf %1, %4 : vector<8x32xf32>
    %cst_5 = arith.constant dense<0.000000e+00> : vector<8x128xf32>
    %6 = tpu.matmul %5, %3, %cst_5 {dimension_numbers = #tpu.dot_dimension_numbers<[1], [1], [0], [0], [0, 0, 1, 0], [], []>} : vector<8x32xf32>, vector<128x32xf32>, vector<8x128xf32> -> vector<8x128xf32>
    %7 = tpu.iota {dimensions = array<i32: 1>} : vector<8x128xi32>
    %c8_i32 = arith.constant 8 : i32
    %8 = vector.broadcast %c8_i32 : i32 to vector<8x128xi32>
    %9 = arith.cmpi slt, %7, %8 : vector<8x128xi32>
    %cst_6 = arith.constant 0xFF800000 : f32
    %10 = vector.broadcast %cst_6 : f32 to vector<8x128xf32>
    %11 = arith.select %9, %6, %10 : vector<8x128xi1>, vector<8x128xf32>
    %cst_7 = arith.constant dense<0xFF800000> : vector<8xf32>
    %12 = vector.multi_reduction <maximumf>, %11, %cst_7 [1] : vector<8x128xf32> to vector<8xf32>
    %13 = vector.shape_cast %12 : vector<8xf32> to vector<8x1xf32>
    %14 = vector.broadcast %13 : vector<8x1xf32> to vector<8x128xf32>
    %15 = arith.subf %11, %14 : vector<8x128xf32>
    %16 = math.exp %15 : vector<8x128xf32>
    %cst_8 = arith.constant dense<0.000000e+00> : vector<8xf32>
    %17 = vector.multi_reduction <add>, %16, %cst_8 [1] : vector<8x128xf32> to vector<8xf32>
    %18 = vector.shape_cast %17 : vector<8xf32> to vector<8x1xf32>
    %cst_9 = arith.constant 1.000000e+00 : f32
    %19 = vector.broadcast %cst_9 : f32 to vector<8x1xf32>
    %20 = arith.divf %19, %18 : vector<8x1xf32>
    %21 = vector.broadcast %20 : vector<8x1xf32> to vector<8x128xf32>
    %22 = arith.mulf %16, %21 : vector<8x128xf32>
    %c0_10 = arith.constant 0 : index
    %c0_11 = arith.constant 0 : index
    %c0_12 = arith.constant 0 : index
    %23 = vector.load %arg5[%c0_10, %c0_11, %c0_12] : memref<1x8x128xf32, #tpu.memory_space<vmem>>, vector<1x8x128xf32>
    %24 = vector.shape_cast %23 : vector<1x8x128xf32> to vector<8x128xf32>
    %25 = vector.shape_cast %22 : vector<8x128xf32> to vector<1x8x128xf32>
    tpu.vector_store %arg5[%c0_10, %c0_11, %c0_12], %25 {strides = array<i32>} : memref<1x8x128xf32, #tpu.memory_space<vmem>>, vector<1x8x128xf32>,
    %cst_13 = arith.constant dense<0.000000e+00> : vector<8x32xf32>
    %26 = tpu.matmul %22, %3, %cst_13 {dimension_numbers = #tpu.dot_dimension_numbers<[1], [0], [0], [1], [0, 0, 1, 1], [], []>} : vector<8x128xf32>, vector<128x32xf32>, vector<8x32xf32> -> vector<8x32xf32>
    %c0_14 = arith.constant 0 : index
    %c0_15 = arith.constant 0 : index
    %c0_16 = arith.constant 0 : index
    %27 = vector.load %arg4[%c0_14, %c0_15, %c0_16] : memref<1x8x32xf32, #tpu.memory_space<vmem>>, vector<1x8x32xf32>
    %28 = vector.shape_cast %27 : vector<1x8x32xf32> to vector<8x32xf32>
    %29 = vector.shape_cast %26 : vector<8x32xf32> to vector<1x8x32xf32>
    tpu.vector_store %arg4[%c0_14, %c0_15, %c0_16], %29 {strides = array<i32>} : memref<1x8x32xf32, #tpu.memory_space<vmem>>, vector<1x8x32xf32>,
    return
  }
  func.func @transform_0(%arg0: i32, %arg1: i32) -> (i32, i32, i32) {
    %c0_i32 = arith.constant 0 : i32
    %c0_i32_0 = arith.constant 0 : i32
    return %arg0, %arg1, %c0_i32 : i32, i32, i32
  }
  func.func @transform_1(%arg0: i32, %arg1: i32) -> (i32, i32, i32) {
    %c0_i32 = arith.constant 0 : i32
    %c0_i32_0 = arith.constant 0 : i32
    %c0_i32_1 = arith.constant 0 : i32
    return %arg0, %c0_i32, %c0_i32_0 : i32, i32, i32
  }
  func.func @transform_2(%arg0: i32, %arg1: i32) -> (i32, i32, i32) {
    %c0_i32 = arith.constant 0 : i32
    %c0_i32_0 = arith.constant 0 : i32
    return %arg0, %arg1, %c0_i32 : i32, i32, i32
  }
  func.func @transform_3(%arg0: i32, %arg1: i32) -> (i32, i32, i32) {
    %c0_i32 = arith.constant 0 : i32
    %c0_i32_0 = arith.constant 0 : i32
    return %arg0, %arg1, %c0_i32 : i32, i32, i32
  }
}

</mosaic_0001>

<bundles_post_ra>
// kernel: tpu_custom_call.1
= control target key start
LH: loop header
LB: loop body
LE: loop exit
PB: predicated region body
PF: predicated region fallthrough
CT: control target
= control target key end

     0   :  { %9 = vsyncpa [#allocation3], 0  ;;  %s1210_s0 = inlined_call_operand.vmem [shape: f32[2,8,32], index: 0, kind: input, shape index: {}]   ;;  %s1211_s1 = inlined_call_operand.vmem [shape: f32[2,128,32], index: 1, kind: input, shape index: {}]   ;;  %s1212_s2 = inlined_call_operand.hbm [shape: f32[2,8,32], index: 2, kind: output, shape index: {0}]   ;;  %s1213_s3 = inlined_call_operand.hbm [shape: f32[2,8,128], index: 3, kind: output, shape index: {1}]  }
   0x1   :  { %11 = vsyncpa [#allocation3 + $0x1], 0 }
   0x2   :  { %12 = vsyncpa [#allocation5], 0 }
   0x3   :  { %14 = vsyncpa [#allocation5 + $0x1], 0  ;;  %s998_s12 = smov 0   ;;  %s1000_s13 = smov 0  }
   0x4   :  { %s1002_s14 = smov 0   ;;  %s1004_s15 = smov 0  }
   0x5   :  { %s1006_s16 = smov 0   ;;  %s1008_s17 = smov 0  }
   0x6 LB: > { %s600_s18 = sadd.s32 4294967295, %s971_s17   ;;  %s601_s19 = sadd.s32 4294967294, %s971_s17   ;;  %s971_s17 = sphi %s1008_s17, %s20_s17   ;;  %s967_s16 = sphi %s1006_s16, %s1222_s16   ;;  %s963_s15 = sphi %s1004_s15, %s1221_s15   ;;  %s959_s14 = sphi %s1002_s14, %s1220_s14   ;;  %s955_s13 = sphi %s1000_s13, %s1219_s13   ;;  %s951_s12 = sphi %s998_s12, %s1218_s12  }
   0x7   : > { %s32_s20 = sadd.s32 1, %s967_s16  ;;  %s95_s21 = sadd.s32 1, %s959_s14 }
   0x8   : > { %p34_p0 = scmp.ge.s32.totalorder %s32_s20, 2  ;;  %p105_p1 = scmp.ne.s32.totalorder %s959_s14, %s955_s13 }
   0x9   : > { %p106_p2 = scmp.eq.s32.totalorder %s600_s18, 1  ;;  %p111_p3 = scmp.ne.s32.totalorder %s955_s13, %s951_s12 }
   0xa   : > { %s1224_s20 = smov (%p34_p0, %s32_s20), 0  ;;  %p112_p5 = scmp.eq.s32.totalorder %s601_s19, 1 }
   0xb   : > { %p1038_p4 = por %p106_p2, %p105_p1  ;;  %s90_s23 = ssub.s32 %s967_s16, %s1224_s20 }
   0xc   : > { %p604_p6 = scmp.ge.s32.totalorder %s971_s17, 1  ;;  %p93_p7 = scmp.eq.s32.totalorder %s90_s23, 0 }
   0xd   : > { %p1045_p8 = por %p112_p5, %p111_p3  ;;  %p176_p9 = scmp.lt.s32.totalorder %s971_s17, 3 }
   0xe   : > { %s1051_s25 = scalar_select %p93_p7, %s959_s14, %s95_s21  }
   0xf   : > { %p177_p10 = pnand %p604_p6, %p176_p9 }
  0x10   : > { %p212_p11 = scmp.lt.s32.totalorder (!%p177_p10), %s963_s15, 1  ;;  %v973_v0 = vmov (!%p177_p10), 0.0|0.0   ;;  %vm974_vm0 = vmmov (!%p177_p10), 0   ;;  %v975_v1 = vmov (!%p177_p10), 0.0   ;;  %vm242_vm1 = vcmask (!%p177_p10), 261120   ;;  %s1123_s8 = sand.u32 (!%p177_p10), 1, %s955_s13  }
  0x11   : > { %180 = sbr.rel (%p177_p10) target bundleno = 845 (0x34d), region = 28  ;;  %738 = vmatprep.subr.bf16.mxu0 (!%p177_p10), %v973_v0  ;;  %700 = vmatprep.mubr.msk.f32.mxu0 (!%p177_p10), %vm974_vm0, %v975_v1  ;;  %vm1069_vm2 = vmpackc.low (!%p177_p10), %vm242_vm1, %vm242_vm1  ;;  %v364_v29 = vlaneseq (!%p177_p10)  ;;  %s605_s9 = sshll.u32 (!%p177_p10), %s1123_s8, 3 }
  0x12   : > { %770 = vmatprep.subr.bf16.mxu1 (!%p177_p10), %v973_v0  ;;  %735 = vmatprep.mubr.msk.f32.mxu1 (!%p177_p10), %vm974_vm0, %v975_v1  ;;  %s211_s10 = scalar_lea.vmem (!%p177_p10), [#allocation4], %s605_s9  ;;  %s629_s11 = sshll.u32 (!%p177_p10), %s963_s15, 7 }
  0x13   : > { %v365_v30 = vand.u32 (!%p177_p10), 127, %v364_v29  ;;  %s1134_s21 = scalar_lea.hbm (!%p177_p10), %s1213_s3, %s629_s11  ;;  %s484_s23 = sshll.u32 (!%p177_p10), %s211_s10, 4  ;;  %s485_s23 = int_to_ptr.vmem [resolvable:$true] %s484_s23 }
  0x14   : > { %s976_s28 = smov (!%p177_p10), [#allocation4]  }
  0x15   : > { %vm366_vm3 = vcmp.lt.s32.totalorder (!%p177_p10), %v365_v30, 8  ;;  %s865_s29 = sshll.u32 (!%p177_p10), %s976_s28, 4  ;;  %s866_s29 = int_to_ptr.vmem [resolvable:$false] %s865_s29 }
  0x16   : > { %p868_p1 = scmp.lt.s32.totalorder (!%p177_p10), %s485_s23, %s866_s29 }
  0x18   : > { %s1056_s26 = scalar_select %p212_p11, %s963_s15, 1 }
  0x1a   : > { %s633_s27 = sshll.u32 %s1056_s26, 7  ;;  %s607_s4 = sshll.u32 %s1056_s26, 3 }
  0x1b   : > { %s1063_s30 = scalar_lea.vmem %s1211_s1, %s633_s27  ;;  %s218_s7 = scalar_lea.vmem %s1210_s0, %s607_s4 }
  0x1c   : > { %v225_v2 = vld [vmem:[%s1063_s30] sm:$0xff]  ;;  %v226_v3 = vld [vmem:[%s1063_s30 + $0x8] sm:$0xff]  ;;  %v227_v6 = vld [vmem:[%s1063_s30 + $0x10] sm:$0xff]  ;;  %s456_s26 = scalar_lea.sflag [#allocation5], %s1123_s8  ;;  %s861_s27 = scalar_lea.vmem %s485_s23, 128 }
  0x1d   : > { %v739_v5 = vpack.c.bf16 %v226_v3, %v225_v2  ;;  %v228_v7 = vld [vmem:[%s1063_s30 + $0x18] sm:$0xff]  ;;  %v229_v9 = vld [vmem:[%s1063_s30 + $0x20] sm:$0xff]  ;;  %v230_v10 = vld [vmem:[%s1063_s30 + $0x28] sm:$0xff]  ;;  %p862_p12 = scmp.ne.s32.totalorder %s485_s23, %s861_s27 }
  0x1e   : > { %v743_v8 = vpack.c.bf16 %v228_v7, %v227_v6  ;;  %v747_v11 = vpack.c.bf16 %v230_v10, %v229_v9  ;;  %v231_v12 = vld [vmem:[%s1063_s30 + $0x30] sm:$0xff]  ;;  %v232_v13 = vld [vmem:[%s1063_s30 + $0x38] sm:$0xff]  ;;  %v233_v15 = vld [vmem:[%s1063_s30 + $0x40] sm:$0xff] }
  0x1f   : > { %741 = vmatpush3.bf16.xpose.msk.msra.mxu0 %vm1069_vm2, %v739_v5  ;;  %772 = vmatpush3.bf16.msra.mxu1 %v739_v5  ;;  %v751_v14 = vpack.c.bf16 %v232_v13, %v231_v12  ;;  %v234_v16 = vld [vmem:[%s1063_s30 + $0x48] sm:$0xff]  ;;  %v235_v18 = vld [vmem:[%s1063_s30 + $0x50] sm:$0xff]  ;;  %v236_v19 = vld [vmem:[%s1063_s30 + $0x58] sm:$0xff]  ;;  %p863_p13 = pnand %p862_p12, %p1038_p4 }
  0x20   : > { %742 = vmatprep.subr.bf16.mxu0 %v973_v0  ;;  %773 = vmatprep.subr.bf16.mxu1 %v973_v0  ;;  %v755_v17 = vpack.c.bf16 %v234_v16, %v233_v15  ;;  %v759_v20 = vpack.c.bf16 %v236_v19, %v235_v18  ;;  %v237_v21 = vld [vmem:[%s1063_s30 + $0x60] sm:$0xff]  ;;  %v238_v22 = vld [vmem:[%s1063_s30 + $0x68] sm:$0xff]  ;;  %v239_v24 = vld [vmem:[%s1063_s30 + $0x70] sm:$0xff] }
  0x21   : > { %v763_v23 = vpack.c.bf16 %v238_v22, %v237_v21  ;;  %v240_v25 = vld [vmem:[%s1063_s30 + $0x78] sm:$0xff]  ;;  %v224_v27 = vld [vmem:[%s218_s7] sm:$0xff]  ;;  %p864_p0 = pneg %p863_p13  ;;  %s867_s30 = scalar_lea.vmem %s866_s29, 256 }
  0x22   : > { %v767_v26 = vpack.c.bf16 %v240_v25, %v239_v24  ;;  %v241_v28 = vmul.f32 0.17677669, %v224_v27  ;;  %p869_p2 = scmp.lt.s32.totalorder %s867_s30, %s861_s27 }
  0x23   : > { %775 = vmatpush3.bf16.msra.mxu1 %v743_v8 }
  0x24   : > { %776 = vmatprep.subr.bf16.mxu1 %v973_v0  ;;  %p870_p3 = por %p869_p2, %p868_p1 }
  0x26   : > { %p871_p5 = pnand %p870_p3, %p864_p0 }
  0x27   : > { %745 = vmatpush3.bf16.xpose.msk.msra.mxu0 %vm1069_vm2, %v743_v8  ;;  %778 = vmatpush3.bf16.msra.mxu1 %v747_v11 }
  0x28   : > { %746 = vmatprep.subr.bf16.mxu0 %v973_v0  ;;  %779 = vmatprep.subr.bf16.mxu1 %v973_v0 }
  0x2b   : > { %781 = vmatpush3.bf16.msra.mxu1 %v751_v14 }
  0x2c   : > { %782 = vmatprep.subr.bf16.mxu1 %v973_v0 }
  0x2f   : > { %749 = vmatpush3.bf16.xpose.msk.msra.mxu0 %vm1069_vm2, %v747_v11  ;;  %784 = vmatpush3.bf16.msra.mxu1 %v755_v17 }
  0x30   : > { %750 = vmatprep.subr.bf16.mxu0 %v973_v0  ;;  %785 = vmatprep.subr.bf16.mxu1 %v973_v0 }
  0x33   : > { %787 = vmatpush3.bf16.msra.mxu1 %v759_v20 }
  0x34   : > { %788 = vmatprep.subr.bf16.mxu1 %v973_v0 }
  0x37   : > { %753 = vmatpush3.bf16.xpose.msk.msra.mxu0 %vm1069_vm2, %v751_v14  ;;  %790 = vmatpush3.bf16.msra.mxu1 %v763_v23 }
  0x38   : > { %754 = vmatprep.subr.bf16.mxu0 %v973_v0  ;;  %791 = vmatprep.subr.bf16.mxu1 %v973_v0 }
  0x3b   : > { %793 = vmatpush3.bf16.msra.mxu1 %v767_v26 }
  0x3f   : > { %757 = vmatpush3.bf16.xpose.msk.msra.mxu0 %vm1069_vm2, %v755_v17 }
  0x40   : > { %758 = vmatprep.subr.bf16.mxu0 %v973_v0 }
  0x47   : > { %761 = vmatpush3.bf16.xpose.msk.msra.mxu0 %vm1069_vm2, %v759_v20 }
  0x48   : > { %762 = vmatprep.subr.bf16.mxu0 %v973_v0 }
  0x4f   : > { %765 = vmatpush3.bf16.xpose.msk.msra.mxu0 %vm1069_vm2, %v763_v23 }
  0x50   : > { %766 = vmatprep.subr.bf16.mxu0 %v973_v0 }
  0x57   : > { %769 = vmatpush3.bf16.xpose.msk.msra.mxu0 %vm1069_vm2, %v767_v26 }
  0x5e   : > { %701 = vmatmul.mubr.msk.f32.vlgmr.msra.gmra.mrb[0].mxu0 %vm242_vm1, %v241_v28 }
 0x131   : > { %v360_v31 = vpop.f32.mrb[0].mxu0 }
 0x132   : > { %v702_v32 = vpop.f32.mrb[1].mxu0  ;;  %v367_v33 = vsel %vm366_vm3, %v360_v31, -inf }
 0x133   : > { %368 = vmax.xlane.f32.xlu0 %v367_v33 }
 0x1c0   : > { %v369_v34 = vpop.xlane.xlu0 %368 }
 0x1c1   : > { %v370_v35 = vsub.f32 %v367_v33, %v369_v34 }
 0x1c3   : > { %v371_v36 = vmul.f32 1.442695, %v370_v35 }
 0x1c5   : > { %857 = vpow2.f32 %v371_v36 }
 0x1cf   : > { %v858_v37 = vpop.eup %857 }
 0x1d0   : > { %373 = vadd.xlane.f32.xlu0 %v858_v37 }
 0x25d   : > { %v374_v38 = vpop.xlane.xlu0 %373 }
 0x25e   : > { %859 = vrcp.f32 %v374_v38 }
 0x268   : > { %v860_v39 = vpop.eup %859 }
 0x269   : > { %v377_v40 = vmul.f32 %v860_v39, %v858_v37 }
 0x26b   : > { %736 = vmatmul.mubr.f32.vlgmr.msra.gmra.mrb[0].mxu1 %v377_v40  ;;  %378 = vst [vmem:[%s211_s10] sm:$0xff] %v377_v40 }
 0x26c   : > { %874 = shalt.err (!%p871_p5)
}
 0x26d   : > { %s875_s4 = scalar_lea.hbm %s1134_s21, 128  ;;  %s879_s7 = scalar_lea.hbm %s1213_s3, 256 }
 0x26e   : > { %p876_p6 = scmp.ne.s32.totalorder %s1134_s21, %s875_s4  ;;  %p880_p10 = scmp.lt.u32.totalorder %s1134_s21, %s1213_s3 }
 0x26f   : > { %p881_p11 = scmp.lt.u32.totalorder %s879_s7, %s875_s4  ;;  %p883_p13 = scmp.lt.u32.totalorder %s875_s4, %s1134_s21 }
 0x270   : > { %p877_p7 = pnand %p876_p6, %p1038_p4 }
 0x271   : > { %p882_p12 = por %p881_p11, %p880_p10 }
 0x272   : > { %p878_p9 = pneg %p877_p7 }
 0x273   : > { %p884_p0 = por %p883_p13, %p882_p12 }
 0x275   : > { %p885_p1 = pnand %p884_p0, %p878_p9 }
 0x277   : > { %888 = shalt.err (!%p885_p1)
}
 0x278   : > { %795 = dma.vmem_to_hbm [thread:$0]  (%p1038_p4), %s485_s23, 128, %s1134_s21, %s456_s26  }
 0x279   : > { %s204_s19 = scalar_lea.vmem [#allocation2], %s605_s9  ;;  %s1161_s30 = scalar_lea.hbm %s1212_s2, %s629_s11 }
 0x27a   : > { %s470_s27 = sshll.u32 %s204_s19, 4  ;;  %s451_s4 = scalar_lea.sflag [#allocation3], %s1123_s8  ;;  %s1163_s27 = int_to_ptr.vmem [resolvable:$true] %s470_s27 }
 0x27b   : > { %s889_s21 = scalar_lea.vmem %s1163_s27, 128  ;;  %s977_s15 = smov [#allocation2]  }
 0x27c   : > { %p890_p2 = scmp.ne.s32.totalorder %s1163_s27, %s889_s21  ;;  %s893_s9 = sshll.u32 %s977_s15, 4  ;;  %s894_s9 = int_to_ptr.vmem [resolvable:$false] %s893_s9 }
 0x27d   : > { %s895_s11 = scalar_lea.vmem %s894_s9, 256  ;;  %p896_p6 = scmp.lt.s32.totalorder %s1163_s27, %s894_s9 }
 0x27e   : > { %p891_p3 = pnand %p890_p2, %p1038_p4  ;;  %p897_p7 = scmp.lt.s32.totalorder %s895_s11, %s889_s21 }
 0x280   : > { %p892_p5 = pneg %p891_p3  ;;  %p898_p9 = por %p897_p7, %p896_p6 }
 0x282   : > { %p899_p10 = pnand %p898_p9, %p892_p5 }
 0x33e   : > { %v445_v41 = vpop.f32.mrb[0].mxu1 }
 0x33f   : > { %449 = vst.msk [vmem:[%s204_s19] sm:$0xff] %vm242_vm1, %v445_v41  ;;  %v737_v42 = vpop.f32.mrb[1].mxu1 }
 0x340   : > { %902 = shalt.err (!%p899_p10)
}
 0x341   : > { %s903_s8 = scalar_lea.hbm %s1161_s30, 128  ;;  %s907_s5 = scalar_lea.hbm %s1212_s2, 256 }
 0x342   : > { %p904_p11 = scmp.ne.s32.totalorder %s1161_s30, %s903_s8  ;;  %p908_p0 = scmp.lt.u32.totalorder %s1161_s30, %s1212_s2 }
 0x343   : > { %p909_p1 = scmp.lt.u32.totalorder %s907_s5, %s903_s8  ;;  %p911_p3 = scmp.lt.u32.totalorder %s903_s8, %s1161_s30 }
 0x344   : > { %p905_p12 = pnand %p904_p11, %p1038_p4 }
 0x345   : > { %p910_p2 = por %p909_p1, %p908_p0 }
 0x346   : > { %p906_p13 = pneg %p905_p12 }
 0x347   : > { %p912_p5 = por %p911_p3, %p910_p2 }
 0x349   : > { %p913_p6 = pnand %p912_p5, %p906_p13 }
 0x34b   : > { %916 = shalt.err (!%p913_p6)
}
 0x34c   : > { %794 = dma.vmem_to_hbm [thread:$0]  (%p1038_p4), %s1163_s27, 128, %s1161_s30, %s451_s4  }
 0x34d PF: > { %p805_p7 = scmp.ge.s32.totalorder %s971_s17, 2  ;;  %s496_s10 = sand.u32 1, %s951_s12  }
 0x34e   : > { %s497_s18 = scalar_lea.sflag [#allocation3], %s496_s10 }
 0x34f   : > { %p799_p9 = pnand %p805_p7, %p1045_p8 }
 0x351   : > { %942 = dma.done.wait (!%p799_p9), %s497_s18, 128  }
 0x352   : > { %944 = vsyncadd (!%p799_p9), %s497_s18, 4294967168  ;;  %s506_s19 = scalar_lea.sflag [#allocation5], %s496_s10 }
 0x353   : > { %946 = dma.done.wait (!%p799_p9), %s506_s19, 128  }
 0x354   : > { %948 = vsyncadd (!%p799_p9), %s506_s19, 4294967168  ;;  %s20_s17 = sadd.s32 1, %s971_s17   ;;  %s1218_s12 = smov %s955_s13 }
 0x355   : > { %p17_p10 = scmp.ge.s32.totalorder %s20_s17, 4   ;;  %s1219_s13 = smov %s959_s14 }
 0x356   : > { %s1220_s14 = smov %s1051_s25  ;;  %s1221_s15 = smov %s967_s16 }
 0x357   : > { %s1222_s16 = smov %s1224_s20  ;;  %19 = sbr.rel (!%p17_p10) target bundleno = 6 (0x6), region = 83 }
 0x35e   :  { %511 = vsyncpa [#allocation3], 1 }
 0x35f   :  { %513 = vsyncpa [#allocation3 + $0x1], 1 }
 0x360   :  { %514 = vsyncpa [#allocation5], 1 }
 0x361   :  { %516 = vsyncpa [#allocation5 + $0x1], 1 }

</bundles_post_ra>
